<compile_context>
chip_gen: v7x
topology: tpu7x:2x2x1
jax: 0.10.0
libtpu: 0.0.40
codegen_flags: <defaults>
</compile_context>

<pallas_src>
import jax
import jax.numpy as jnp
from jax.experimental import pallas as pl
from jax.experimental.pallas import tpu as pltpu

INPUT_SIZE = 34
HIDDEN1 = 64
HIDDEN2 = 32
NUM_CLASSES = 2

TILE_B = 1024  # batch rows per grid step (multiple of 8 sublanes)


def _mlp_kernel(x_ref, w1_ref, b1_ref, w2_ref, b2_ref, w3_ref, b3_ref, o_ref):
    # x arrives in its native f32; cast to bf16 in-kernel for the MXU path
    # (avoids an extra wrapper-side HBM pass over x).
    x = x_ref[...].astype(jnp.bfloat16)

    # Layer 1: Linear(34 -> 64) + ReLU
    h1 = jnp.dot(x, w1_ref[...], preferred_element_type=jnp.float32) + b1_ref[...]
    h1 = jnp.maximum(h1, 0.0)
    # TODO(synk): Dropout(0.2) is identity in eval/inference mode; training-mode
    # stochastic masking (pltpu.prng_*) intentionally not applied here.

    # Layer 2: Linear(64 -> 32) + ReLU
    h2 = jnp.dot(h1.astype(jnp.bfloat16), w2_ref[...],
                 preferred_element_type=jnp.float32) + b2_ref[...]
    h2 = jnp.maximum(h2, 0.0)

    # Layer 3: Linear(32 -> 2)
    out = jnp.dot(h2.astype(jnp.bfloat16), w3_ref[...],
                  preferred_element_type=jnp.float32) + b3_ref[...]
    o_ref[...] = out.astype(o_ref.dtype)


def neural_net_forward(x, params):
    """Runs the full MLP forward pass in a batch-tiled Pallas kernel.

    x: (B, 34) or (34,) float32
    params: dict with w1,b1,w2,b2,w3,b3 (weights as (in, out) bf16;
            biases as (1, out) f32)
    """
    if x.ndim == 1:               # mirrors `if x.dim() == 1: x = x.unsqueeze(0)`
        x = x[None, :]
    batch = x.shape[0]

    if batch <= TILE_B:
        # Single grid step; block shape equals the full array, so no padding
        # and no (8,128) divisibility requirement on the batch dim.
        tile_b = batch
        padded = batch
        x_in = x
    else:
        tile_b = TILE_B
        padded = pl.cdiv(batch, tile_b) * tile_b
        x_in = x if padded == batch else jnp.pad(x, ((0, padded - batch), (0, 0)))

    grid = (padded // tile_b,)

    # Weights/biases: constant index_map -> DMA'd once, VMEM-resident.
    def const_spec(shape):
        return pl.BlockSpec(shape, lambda i: (0, 0))

    out = pl.pallas_call(
        _mlp_kernel,
        out_shape=jax.ShapeDtypeStruct((padded, NUM_CLASSES), jnp.float32),
        grid=grid,
        in_specs=[
            pl.BlockSpec((tile_b, INPUT_SIZE), lambda i: (i, 0)),     # x (tiled)
            const_spec((INPUT_SIZE, HIDDEN1)),                        # w1
            const_spec((1, HIDDEN1)),                                 # b1
            const_spec((HIDDEN1, HIDDEN2)),                           # w2
            const_spec((1, HIDDEN2)),                                 # b2
            const_spec((HIDDEN2, NUM_CLASSES)),                       # w3
            const_spec((1, NUM_CLASSES)),                             # b3
        ],
        out_specs=pl.BlockSpec((tile_b, NUM_CLASSES), lambda i: (i, 0)),
        compiler_params=pltpu.CompilerParams(
            dimension_semantics=("parallel",),   # v7x megacore sharding
        ),
    )(x_in,
      params["w1"], params["b1"],
      params["w2"], params["b2"],
      params["w3"], params["b3"])

    if padded != batch:
        out = out[:batch]
    return out


def init_params(key):
    """Deterministic init mimicking PyTorch's default Linear init
    (uniform(-1/sqrt(fan_in), 1/sqrt(fan_in))).

    Weights are stored (in, out) in bfloat16 (VMEM-resident, native MXU path);
    biases stay (1, out) float32 (added to the f32 accumulator).
    """
    def linear(key, fan_in, fan_out):
        kw, kb = jax.random.split(key)
        bound = 1.0 / jnp.sqrt(fan_in)
        w = jax.random.uniform(kw, (fan_in, fan_out), jnp.float32, -bound, bound)
        b = jax.random.uniform(kb, (1, fan_out), jnp.float32, -bound, bound)
        return w.astype(jnp.bfloat16), b

    k1, k2, k3 = jax.random.split(key, 3)
    w1, b1 = linear(k1, INPUT_SIZE, HIDDEN1)
    w2, b2 = linear(k2, HIDDEN1, HIDDEN2)
    w3, b3 = linear(k3, HIDDEN2, NUM_CLASSES)
    return {"w1": w1, "b1": b1, "w2": w2, "b2": b2, "w3": w3, "b3": b3}


def _reference(x, params):
    """Plain-JAX reference with the same bf16 weight quantization."""
    w1 = params["w1"].astype(jnp.float32)
    w2 = params["w2"].astype(jnp.float32)
    w3 = params["w3"].astype(jnp.float32)
    h1 = jnp.maximum(x @ w1 + params["b1"], 0.0)
    h2 = jnp.maximum(h1 @ w2 + params["b2"], 0.0)
    return h2 @ w3 + params["b3"]


if __name__ == "__main__":
    key = jax.random.PRNGKey(0)
    pkey, xkey, xkey2 = jax.random.split(key, 3)

    params = init_params(pkey)

    # Small batch: single grid step (block = full array).
    batch = 2
    x = jax.random.normal(xkey, (batch, INPUT_SIZE), jnp.float32)
    out = neural_net_forward(x, params)
    jax.block_until_ready(out)

    assert out.shape == (batch, NUM_CLASSES)
    # bf16 activations/weights inside the kernel -> loosened tolerance.
    assert jnp.allclose(out, _reference(x, params), atol=5e-2, rtol=5e-2)

    # Larger batch: exercises the tiled grid + padding path.
    batch2 = 2100
    x2 = jax.random.normal(xkey2, (batch2, INPUT_SIZE), jnp.float32)
    out2 = neural_net_forward(x2, params)
    jax.block_until_ready(out2)

    assert out2.shape == (batch2, NUM_CLASSES)
    assert jnp.allclose(out2, _reference(x2, params), atol=5e-2, rtol=5e-2)

    print("KERNEL_OK")
</pallas_src>

<mosaic_0001>
module attributes {stable_mosaic.version = 11 : i64} {
  func.func @_mlp_kernel(%arg0: i32, %arg1: memref<2x34xf32, #tpu.memory_space<vmem>>, %arg2: memref<34x64xbf16, #tpu.memory_space<vmem>>, %arg3: memref<1x64xf32, #tpu.memory_space<vmem>>, %arg4: memref<64x32xbf16, #tpu.memory_space<vmem>>, %arg5: memref<1x32xf32, #tpu.memory_space<vmem>>, %arg6: memref<32x2xbf16, #tpu.memory_space<vmem>>, %arg7: memref<1x2xf32, #tpu.memory_space<vmem>>, %arg8: memref<2x2xf32, #tpu.memory_space<vmem>>) attributes {dimension_semantics = [#tpu.dimension_semantics<parallel>], iteration_bounds = array<i64: 1>, scalar_prefetch = 0 : i64, scratch_operands = 0 : i64, tpu.core_type = #tpu.core_type<tc>, window_params = [{transform_indices = @transform_0, window_bounds = array<i64: 2, 34>}, {pipeline_mode = #tpu.pipeline_mode<synchronous>, transform_indices = @transform_1, window_bounds = array<i64: 34, 64>}, {pipeline_mode = #tpu.pipeline_mode<synchronous>, transform_indices = @transform_2, window_bounds = array<i64: 1, 64>}, {pipeline_mode = #tpu.pipeline_mode<synchronous>, transform_indices = @transform_3, window_bounds = array<i64: 64, 32>}, {pipeline_mode = #tpu.pipeline_mode<synchronous>, transform_indices = @transform_4, window_bounds = array<i64: 1, 32>}, {pipeline_mode = #tpu.pipeline_mode<synchronous>, transform_indices = @transform_5, window_bounds = array<i64: 32, 2>}, {pipeline_mode = #tpu.pipeline_mode<synchronous>, transform_indices = @transform_6, window_bounds = array<i64: 1, 2>}, {transform_indices = @transform_7, window_bounds = array<i64: 2, 2>}]} {
    %c0 = arith.constant 0 : index
    %c0_0 = arith.constant 0 : index
    %0 = vector.load %arg1[%c0, %c0_0] : memref<2x34xf32, #tpu.memory_space<vmem>>, vector<2x34xf32>
    %1 = arith.truncf %0 : vector<2x34xf32> to vector<2x34xbf16>
    %c0_1 = arith.constant 0 : index
    %c0_2 = arith.constant 0 : index
    %2 = vector.load %arg2[%c0_1, %c0_2] : memref<34x64xbf16, #tpu.memory_space<vmem>>, vector<34x64xbf16>
    %cst = arith.constant dense<0.000000e+00> : vector<2x64xf32>
    %3 = tpu.matmul %1, %2, %cst {dimension_numbers = #tpu.dot_dimension_numbers<[1], [0], [0], [1], [0, 0, 1, 1], [], []>} : vector<2x34xbf16>, vector<34x64xbf16>, vector<2x64xf32> -> vector<2x64xf32>
    %c0_3 = arith.constant 0 : index
    %c0_4 = arith.constant 0 : index
    %4 = vector.load %arg3[%c0_3, %c0_4] : memref<1x64xf32, #tpu.memory_space<vmem>>, vector<1x64xf32>
    %5 = vector.broadcast %4 : vector<1x64xf32> to vector<2x64xf32>
    %6 = arith.addf %3, %5 : vector<2x64xf32>
    %cst_5 = arith.constant 0.000000e+00 : f32
    %7 = vector.broadcast %cst_5 : f32 to vector<2x64xf32>
    %8 = arith.maximumf %6, %7 : vector<2x64xf32>
    %9 = arith.truncf %8 : vector<2x64xf32> to vector<2x64xbf16>
    %c0_6 = arith.constant 0 : index
    %c0_7 = arith.constant 0 : index
    %10 = vector.load %arg4[%c0_6, %c0_7] : memref<64x32xbf16, #tpu.memory_space<vmem>>, vector<64x32xbf16>
    %cst_8 = arith.constant dense<0.000000e+00> : vector<2x32xf32>
    %11 = tpu.matmul %9, %10, %cst_8 {dimension_numbers = #tpu.dot_dimension_numbers<[1], [0], [0], [1], [0, 0, 1, 1], [], []>} : vector<2x64xbf16>, vector<64x32xbf16>, vector<2x32xf32> -> vector<2x32xf32>
    %c0_9 = arith.constant 0 : index
    %c0_10 = arith.constant 0 : index
    %12 = vector.load %arg5[%c0_9, %c0_10] : memref<1x32xf32, #tpu.memory_space<vmem>>, vector<1x32xf32>
    %13 = vector.broadcast %12 : vector<1x32xf32> to vector<2x32xf32>
    %14 = arith.addf %11, %13 : vector<2x32xf32>
    %cst_11 = arith.constant 0.000000e+00 : f32
    %15 = vector.broadcast %cst_11 : f32 to vector<2x32xf32>
    %16 = arith.maximumf %14, %15 : vector<2x32xf32>
    %17 = arith.truncf %16 : vector<2x32xf32> to vector<2x32xbf16>
    %c0_12 = arith.constant 0 : index
    %c0_13 = arith.constant 0 : index
    %18 = vector.load %arg6[%c0_12, %c0_13] : memref<32x2xbf16, #tpu.memory_space<vmem>>, vector<32x2xbf16>
    %cst_14 = arith.constant dense<0.000000e+00> : vector<2x2xf32>
    %19 = tpu.matmul %17, %18, %cst_14 {dimension_numbers = #tpu.dot_dimension_numbers<[1], [0], [0], [1], [0, 0, 1, 1], [], []>} : vector<2x32xbf16>, vector<32x2xbf16>, vector<2x2xf32> -> vector<2x2xf32>
    %c0_15 = arith.constant 0 : index
    %c0_16 = arith.constant 0 : index
    %20 = vector.load %arg7[%c0_15, %c0_16] : memref<1x2xf32, #tpu.memory_space<vmem>>, vector<1x2xf32>
    %21 = vector.broadcast %20 : vector<1x2xf32> to vector<2x2xf32>
    %22 = arith.addf %19, %21 : vector<2x2xf32>
    %c0_17 = arith.constant 0 : index
    %c0_18 = arith.constant 0 : index
    %23 = vector.load %arg8[%c0_17, %c0_18] : memref<2x2xf32, #tpu.memory_space<vmem>>, vector<2x2xf32>
    tpu.vector_store %arg8[%c0_17, %c0_18], %22 {strides = array<i32>} : memref<2x2xf32, #tpu.memory_space<vmem>>, vector<2x2xf32>,
    return
  }
  func.func @transform_0(%arg0: i32) -> (i32, i32) {
    %c0_i32 = arith.constant 0 : i32
    %c0_i32_0 = arith.constant 0 : i32
    return %arg0, %c0_i32 : i32, i32
  }
  func.func @transform_1(%arg0: i32) -> (i32, i32) {
    %c0_i32 = arith.constant 0 : i32
    %c0_i32_0 = arith.constant 0 : i32
    %c0_i32_1 = arith.constant 0 : i32
    return %c0_i32, %c0_i32_0 : i32, i32
  }
  func.func @transform_2(%arg0: i32) -> (i32, i32) {
    %c0_i32 = arith.constant 0 : i32
    %c0_i32_0 = arith.constant 0 : i32
    %c0_i32_1 = arith.constant 0 : i32
    return %c0_i32, %c0_i32_0 : i32, i32
  }
  func.func @transform_3(%arg0: i32) -> (i32, i32) {
    %c0_i32 = arith.constant 0 : i32
    %c0_i32_0 = arith.constant 0 : i32
    %c0_i32_1 = arith.constant 0 : i32
    return %c0_i32, %c0_i32_0 : i32, i32
  }
  func.func @transform_4(%arg0: i32) -> (i32, i32) {
    %c0_i32 = arith.constant 0 : i32
    %c0_i32_0 = arith.constant 0 : i32
    %c0_i32_1 = arith.constant 0 : i32
    return %c0_i32, %c0_i32_0 : i32, i32
  }
  func.func @transform_5(%arg0: i32) -> (i32, i32) {
    %c0_i32 = arith.constant 0 : i32
    %c0_i32_0 = arith.constant 0 : i32
    %c0_i32_1 = arith.constant 0 : i32
    return %c0_i32, %c0_i32_0 : i32, i32
  }
  func.func @transform_6(%arg0: i32) -> (i32, i32) {
    %c0_i32 = arith.constant 0 : i32
    %c0_i32_0 = arith.constant 0 : i32
    %c0_i32_1 = arith.constant 0 : i32
    return %c0_i32, %c0_i32_0 : i32, i32
  }
  func.func @transform_7(%arg0: i32) -> (i32, i32) {
    %c0_i32 = arith.constant 0 : i32
    %c0_i32_0 = arith.constant 0 : i32
    return %arg0, %c0_i32 : i32, i32
  }
}

</mosaic_0001>

<bundles_post_ra>
// kernel: tpu_custom_call.1
= control target key start
LH: loop header
LB: loop body
LE: loop exit
PB: predicated region body
PF: predicated region fallthrough
CT: control target
= control target key end

     0   :  { %v368_v1 = vmov 0.0   ;;  %vm61_vm0 = vcmask 1040384   ;;  %vm369_vm1 = vmmov 0   ;;  %s465_s0 = inlined_call_operand.vmem [shape: f32[2,34], index: 0, kind: input, shape index: {}]   ;;  %s466_s1 = inlined_call_operand.vmem [shape: bf16[34,64], index: 1, kind: input, shape index: {}]   ;;  %s467_s2 = inlined_call_operand.vmem [shape: f32[1,64], index: 2, kind: input, shape index: {}]   ;;  %s468_s3 = inlined_call_operand.vmem [shape: bf16[64,32], index: 3, kind: input, shape index: {}]   ;;  %s469_s4 = inlined_call_operand.vmem [shape: f32[1,32], index: 4, kind: input, shape index: {}]   ;;  %s470_s5 = inlined_call_operand.vmem [shape: bf16[32,2], index: 5, kind: input, shape index: {}]   ;;  %s471_s6 = inlined_call_operand.vmem [shape: f32[1,2], index: 6, kind: input, shape index: {}]   ;;  %s472_s7 = inlined_call_operand.hbm [shape: f32[2,2], index: 7, kind: output, shape index: {}]  }
   0x1   :  { %v335_v0 = vld [vmem:[%s466_s1] sm:$0xff]   ;;  %302 = vmatprep.subr.bf16.mxu0 %v368_v1  ;;  %v336_v2 = vld [vmem:[%s466_s1 + $0x8] sm:$0xff]   ;;  %312 = vmatprep.subr.bf16.mxu1 %v368_v1  ;;  %v337_v3 = vld [vmem:[%s466_s1 + $0x10] ss:$0 sps:$4 sm:$0x11]  }
   0x2   :  { %303 = vmatpush3.bf16.msra.mxu0 %v335_v0  ;;  %308 = vmatprep.mubr.msk.bf16.mxu0 %vm369_vm1, %v368_v1  ;;  %v338_v4 = vld [vmem:[%s468_s3] sm:$0xff]   ;;  %v63_v6 = vsel %vm61_vm0, %v337_v3, 0  ;;  %v339_v7 = vld [vmem:[%s468_s3 + $0x8] sm:$0xff]  }
   0x3   :  { %304 = vmatprep.subr.bf16.mxu0 %v368_v1  ;;  %v28_v5 = vld [vmem:[%s465_s0] sm:$0x3]  ;;  %320 = vmatprep.mubr.msk.bf16.mxu1 %vm369_vm1, %v368_v1 }
   0x4   :  { %313 = vmatpush3.bf16.msra.mxu1 %v338_v4 }
   0x5   :  { %314 = vmatprep.subr.bf16.mxu1 %v368_v1 }
   0x6   :  { %305 = vmatpush3.bf16.msra.mxu0 %v336_v2 }
   0x7   :  { %306 = vmatprep.subr.bf16.mxu0 %v368_v1 }
   0x8   :  { %12 = vsyncpa [#allocation3], 0  ;;  %v29_v8 = vpack.c.bf16 %v28_v5, %v28_v5  ;;  %315 = vmatpush3.bf16.msra.mxu1 %v339_v7  ;;  %vm57_vm2 = vcmask 277504   ;;  %v340_v9 = vld [vmem:[%s468_s3 + $0x10] sm:$0xff]   ;;  %v341_v10 = vld [vmem:[%s468_s3 + $0x18] sm:$0xff]   ;;  %vm146_vm3 = vcmask 523264  }
   0x9   :  { %316 = vmatprep.subr.bf16.mxu1 %v368_v1  ;;  %v342_v11 = vld [vmem:[%s470_s5] sm:$0xff]   ;;  %v343_v20 = vld [vmem:[%s470_s5 + $0x8] sm:$0xff]   ;;  %vm215_vm4 = vcmask 261120   ;;  %s370_s23 = smov [#allocation2]   ;;  %vm259_vm5 = vcmask 9216  }
   0xa   :  { %307 = vmatpush3.bf16.msra.mxu0 %v63_v6  ;;  %v275_v12 = vld [vmem:[%s467_s2] ss:$0 sm:$0xff]  ;;  %s267_s5 = sshll.u32 %s370_s23, 4  ;;  %s268_s5 = int_to_ptr.vmem [resolvable:$true] %s267_s5 }
   0xb   :  { %324 = vmatprep.subr.bf16.mxu0 %v368_v1  ;;  %v280_v21 = vld [vmem:[%s469_s4] ss:$0 sm:$0xff]  ;;  %s344_s4 = scalar_lea.vmem %s268_s5, 32  ;;  %p349_p1 = scmp.lt.s32.totalorder %s268_s5, %s268_s5 }
   0xc   :  { %317 = vmatpush3.bf16.msra.mxu1 %v340_v9  ;;  %v286_v29 = vld [vmem:[%s471_s6] ss:$0 sm:$0xff]  ;;  %p345_p0 = scmp.ne.s32.totalorder %s268_s5, %s344_s4  ;;  %p350_p2 = scmp.lt.s32.totalorder %s344_s4, %s344_s4 }
   0xd   :  { %309 = vmatmul.mubr.msk.bf16.vlgmr.msra.gmra.mrb[0].mxu0 %vm57_vm2, %v29_v8  ;;  %318 = vmatprep.subr.bf16.mxu1 %v368_v1 }
   0xe   :  { %328 = vmatprep.mubr.msk.bf16.mxu0 %vm369_vm1, %v368_v1  ;;  %325 = vmatpush3.bf16.msra.mxu0 %v342_v11  ;;  %p351_p3 = por %p350_p2, %p349_p1 }
   0xf   :  { %326 = vmatprep.subr.bf16.mxu0 %v368_v1 }
  0x10   :  { %319 = vmatpush3.bf16.msra.mxu1 %v341_v10  ;;  %p352_p4 = pnand %p351_p3, %p345_p0 }
  0x12   :  { %327 = vmatpush3.bf16.msra.mxu0 %v343_v20 }
  0xe0   :  { %v99_v13 = vpop.f32.mrb[0].mxu0 }
  0xe1   :  { %v100_v14 = vadd.f32 %v275_v12, %v99_v13  ;;  %v310_v15 = vpop.f32.mrb[1].mxu0 }
  0xe2   :  { %v102_v16 = vpop.f32.mrb[2].mxu0 }
  0xe3   :  { %v105_v17 = vmax.f32 %v100_v14, 0.0  ;;  %v311_v18 = vpop.f32.mrb[3].mxu0 }
  0xe5   :  { %v106_v19 = vpack.c.bf16 %v105_v17, %v105_v17 }
  0xe7   :  { %321 = vmatmul.mubr.msk.bf16.vlgmr.msra.gmra.mrb[0].mxu1 %vm146_vm3, %v106_v19 }
 0x1ba   :  { %v184_v22 = vpop.f32.mrb[0].mxu1 }
 0x1bb   :  { %v185_v23 = vadd.f32 %v280_v21, %v184_v22  ;;  %v322_v24 = vpop.f32.mrb[1].mxu1 }
 0x1bc   :  { %v187_v25 = vpop.f32.mrb[2].mxu1 }
 0x1bd   :  { %v190_v26 = vmax.f32 %v185_v23, 0.0  ;;  %v323_v27 = vpop.f32.mrb[3].mxu1 }
 0x1bf   :  { %v191_v28 = vpack.c.bf16 %v190_v26, %v190_v26 }
 0x1c1   :  { %329 = vmatmul.mubr.msk.bf16.vlgmr.msra.gmra.mrb[4].mxu0 %vm215_vm4, %v191_v28 }
 0x294   :  { %v253_v30 = vpop.f32.mrb[4].mxu0 }
 0x295   :  { %v254_v31 = vadd.f32 %v286_v29, %v253_v30  ;;  %v330_v32 = vpop.f32.mrb[5].mxu0 }
 0x296   :  { %v256_v33 = vpop.f32.mrb[6].mxu0 }
 0x297   :  { %v331_v34 = vpop.f32.mrb[7].mxu0  ;;  %260 = vst.msk [vmem:[#allocation2] sm:$0x3] %vm259_vm5, %v254_v31 }
 0x298   :  { %355 = shalt.err (!%p352_p4)
}
 0x299   :  { %s356_s6 = scalar_lea.hbm %s472_s7, 32 }
 0x29a   :  { %p357_p5 = scmp.ne.s32.totalorder %s472_s7, %s356_s6  ;;  %p360_p6 = scmp.lt.u32.totalorder %s356_s6, %s472_s7 }
 0x29c   :  { %p362_p7 = pnand %p360_p6, %p357_p5 }
 0x29e   :  { %365 = shalt.err (!%p362_p7)
}
 0x29f   :  { %270 = dma.vmem_to_hbm [thread:$0]  %s268_s5, 32, %s472_s7, [#allocation3]  }
 0x2a0   :  { %366 = dma.done.wait [#allocation3], 32  }
 0x2a1   :  { %367 = vsyncadd [#allocation3], 4294967264 }
 0x2a2   :  { %274 = vsyncpa [#allocation3], 1 }

</bundles_post_ra>
